<compile_context>
chip_gen: v6e
topology: v6e:2x2x1
jax: 0.10.0
libtpu: 0.0.40
codegen_flags: <defaults>
</compile_context>

<pallas_src>
import functools

import jax
import jax.numpy as jnp
from jax.experimental import pallas as pl
from jax.experimental.pallas import tpu as pltpu


def _rmse_partial_kernel(yhat_ref, y_ref, out_ref, acc_ref, *,
                         rows, tile_rows, inner_tiles, needs_mask):
    """Accumulates sum((yhat-y)^2) for this core's slice of row tiles.

    Grid = (outer, inner_tiles): outer is the (parallel) core split, inner is
    the sequential reduction over row tiles.  Each core writes its raw partial
    sum to out_ref on its last inner step.
    """
    c = pl.program_id(0)   # core / outer split ("parallel")
    i = pl.program_id(1)   # row-tile within the split ("arbitrary" reduction)

    @pl.when(i == 0)
    def _init():
        acc_ref[...] = jnp.zeros_like(acc_ref)

    d = yhat_ref[...].astype(jnp.float32) - y_ref[...].astype(jnp.float32)
    sq = d * d
    if needs_mask:
        # Zero contributions from rows past the end of the array (ragged tail
        # of the last tile, and fully-dead clamped tiles on the second core).
        g = c * inner_tiles + i                   # global row-tile index
        valid_rows = rows - g * tile_rows         # may be <= 0 for dead tiles
        row_ids = jax.lax.broadcasted_iota(jnp.int32, sq.shape, 0)
        sq = jnp.where(row_ids < valid_rows, sq, jnp.float32(0.0))
    acc_ref[...] += sq                            # pure VPU in steady state

    @pl.when(i == inner_tiles - 1)
    def _finalize():
        out_ref[0, 0] = jnp.sum(acc_ref[...])     # single cross-lane reduce


def _as_2d(a):
    """Collapse to 2-D without padding (layout-friendly, usually copy-free)."""
    if a.ndim >= 2:
        return a.reshape(-1, a.shape[-1])
    n = a.size
    if n % 128 == 0 and n > 0:
        return a.reshape(n // 128, 128)
    # Small / misaligned 1-D or 0-D input: treat as a single row.
    return a.reshape(1, n)


def _pick_tile_rows(rows, cols, in_itemsize, max_tile_rows, vmem_budget_bytes):
    lane_cols = ((cols + 127) // 128) * 128            # VMEM lane padding
    bytes_in = max(int(in_itemsize), 1)
    # Per block row: 2 inputs x 2 pipeline buffers (input dtype) + f32 acc.
    per_row = 2 * 2 * lane_cols * bytes_in + lane_cols * 4
    budget_rows = max(vmem_budget_bytes // per_row, 8)
    tile = int(min(max_tile_rows, budget_rows))
    tile = max(8, (tile // 8) * 8)                     # sublane multiple of 8
    if rows <= tile:
        return rows                                    # one full-dim row block
    return tile


def rmse_loss(yhat: jax.Array, y: jax.Array, *,
              max_tile_rows: int = 2048,
              vmem_budget_bytes: int = 8 * 1024 * 1024) -> jax.Array:
    """Pallas TPU implementation of RMSELoss.forward: sqrt(mean((yhat-y)**2))."""
    assert yhat.shape == y.shape, "yhat and y must have identical shapes"
    n = yhat.size
    if n == 0:
        # torch.nn.MSELoss on empty input yields nan.
        return jnp.float32(float("nan"))

    yhat2 = _as_2d(yhat)
    y2 = _as_2d(y)
    rows, cols = yhat2.shape

    tile_rows = _pick_tile_rows(rows, cols, yhat2.dtype.itemsize,
                                max_tile_rows, vmem_budget_bytes)
    row_tiles = pl.cdiv(rows, tile_rows)            # total row tiles
    outer = 2 if row_tiles > 1 else 1               # split across up to 2 TCs (v7x)
    inner_tiles = pl.cdiv(row_tiles, outer)
    needs_mask = (outer * inner_tiles * tile_rows) != rows
    needs_clamp = (outer * inner_tiles) > row_tiles  # second core may overhang

    if needs_clamp:
        def in_map(c, i):
            return (jnp.minimum(c * inner_tiles + i, row_tiles - 1), 0)
    else:
        def in_map(c, i):
            return (c * inner_tiles + i, 0)

    kernel = functools.partial(
        _rmse_partial_kernel,
        rows=rows, tile_rows=tile_rows,
        inner_tiles=inner_tiles, needs_mask=needs_mask)

    partials = pl.pallas_call(
        kernel,
        out_shape=jax.ShapeDtypeStruct((outer, 1), jnp.float32),
        grid_spec=pltpu.PrefetchScalarGridSpec(
            num_scalar_prefetch=0,
            grid=(outer, inner_tiles),
            in_specs=[
                pl.BlockSpec((tile_rows, cols), in_map),
                pl.BlockSpec((tile_rows, cols), in_map),
            ],
            out_specs=pl.BlockSpec((1, 1), lambda c, i: (c, 0),
                                   memory_space=pltpu.SMEM),
            scratch_shapes=[pltpu.VMEM((tile_rows, cols), jnp.float32)],
        ),
        compiler_params=pltpu.CompilerParams(
            dimension_semantics=("parallel", "arbitrary"),
        ),
    )(yhat2, y2)

    # Finalize outside the hot loop: combine per-core partials, mean, sqrt.
    total = jnp.sum(partials)
    return jnp.sqrt(total / jnp.float32(n))


if __name__ == "__main__":
    key = jax.random.PRNGKey(0)
    k1, k2, k3, k4 = jax.random.split(key, 4)

    # Primary example: a small (2, 4, 16, 16) prediction/target volume
    # (MSELoss averages over all elements regardless of layout).
    shape = (2, 4, 16, 16)
    yhat = jax.random.normal(k1, shape, dtype=jnp.float32)
    y = jax.random.normal(k2, shape, dtype=jnp.float32)
    loss = rmse_loss(yhat, y)
    jax.block_until_ready(loss)
    ref = jnp.sqrt(jnp.mean((yhat - y) ** 2))
    assert jnp.allclose(loss, ref, rtol=1e-5, atol=1e-6), (loss, ref)

    # Ragged multi-tile path: small max_tile_rows forces several row tiles, the
    # 2-way parallel split, and in-kernel tail masking.
    shape2 = (300, 8)
    yhat2 = jax.random.normal(k3, shape2, dtype=jnp.float32)
    y2 = jax.random.normal(k4, shape2, dtype=jnp.float32)
    loss2 = rmse_loss(yhat2, y2, max_tile_rows=16)
    jax.block_until_ready(loss2)
    ref2 = jnp.sqrt(jnp.mean((yhat2 - y2) ** 2))
    assert jnp.allclose(loss2, ref2, rtol=1e-5, atol=1e-6), (loss2, ref2)

    print("KERNEL_OK")
</pallas_src>

<mosaic_0001>
module attributes {stable_mosaic.version = 11 : i64} {
  func.func @_rmse_partial_kernel(%arg0: i32, %arg1: i32, %arg2: memref<128x16xf32, #tpu.memory_space<vmem>>, %arg3: memref<128x16xf32, #tpu.memory_space<vmem>>, %arg4: memref<1x1xf32, #tpu.memory_space<smem>>, %arg5: memref<128x16xf32, #tpu.memory_space<vmem>>) attributes {dimension_semantics = [#tpu.dimension_semantics<parallel>, #tpu.dimension_semantics<arbitrary>], iteration_bounds = array<i64: 1, 1>, scalar_prefetch = 0 : i64, scratch_operands = 1 : i64, tpu.core_type = #tpu.core_type<tc>, window_params = [{transform_indices = @transform_0, window_bounds = array<i64: 128, 16>}, {transform_indices = @transform_1, window_bounds = array<i64: 128, 16>}, {transform_indices = @transform_2, window_bounds = array<i64: 1, 1>}]} {
    %c0_i32 = arith.constant 0 : i32
    %0 = arith.cmpi eq, %arg1, %c0_i32 : i32
    %1 = arith.extui %0 : i1 to i32
    %c0_i32_0 = arith.constant 0 : i32
    %2 = arith.cmpi ne, %1, %c0_i32_0 : i32
    scf.if %2 {
      %cst = arith.constant 0.000000e+00 : f32
      %13 = vector.broadcast %cst : f32 to vector<128x16xf32>
      %c0_10 = arith.constant 0 : index
      %c0_11 = arith.constant 0 : index
      %14 = vector.load %arg5[%c0_10, %c0_11] : memref<128x16xf32, #tpu.memory_space<vmem>>, vector<128x16xf32>
      tpu.vector_store %arg5[%c0_10, %c0_11], %13 {strides = array<i32>} : memref<128x16xf32, #tpu.memory_space<vmem>>, vector<128x16xf32>,
    } else {
    }
    %c0 = arith.constant 0 : index
    %c0_1 = arith.constant 0 : index
    %3 = vector.load %arg2[%c0, %c0_1] : memref<128x16xf32, #tpu.memory_space<vmem>>, vector<128x16xf32>
    %c0_2 = arith.constant 0 : index
    %c0_3 = arith.constant 0 : index
    %4 = vector.load %arg3[%c0_2, %c0_3] : memref<128x16xf32, #tpu.memory_space<vmem>>, vector<128x16xf32>
    %5 = arith.subf %3, %4 : vector<128x16xf32>
    %6 = arith.mulf %5, %5 : vector<128x16xf32>
    %c0_4 = arith.constant 0 : index
    %c0_5 = arith.constant 0 : index
    %7 = vector.load %arg5[%c0_4, %c0_5] : memref<128x16xf32, #tpu.memory_space<vmem>>, vector<128x16xf32>
    %8 = arith.addf %7, %6 : vector<128x16xf32>
    %c0_6 = arith.constant 0 : index
    %c0_7 = arith.constant 0 : index
    %9 = vector.load %arg5[%c0_6, %c0_7] : memref<128x16xf32, #tpu.memory_space<vmem>>, vector<128x16xf32>
    tpu.vector_store %arg5[%c0_6, %c0_7], %8 {strides = array<i32>} : memref<128x16xf32, #tpu.memory_space<vmem>>, vector<128x16xf32>,
    %c0_i32_8 = arith.constant 0 : i32
    %10 = arith.cmpi eq, %arg1, %c0_i32_8 : i32
    %11 = arith.extui %10 : i1 to i32
    %c0_i32_9 = arith.constant 0 : i32
    %12 = arith.cmpi ne, %11, %c0_i32_9 : i32
    scf.if %12 {
      %c0_10 = arith.constant 0 : index
      %c0_11 = arith.constant 0 : index
      %13 = vector.load %arg5[%c0_10, %c0_11] : memref<128x16xf32, #tpu.memory_space<vmem>>, vector<128x16xf32>
      %14 = vector.shape_cast %13 : vector<128x16xf32> to vector<1x128x16xf32>
      %cst = arith.constant dense<0.000000e+00> : vector<1xf32>
      %15 = vector.multi_reduction <add>, %14, %cst [1, 2] : vector<1x128x16xf32> to vector<1xf32>
      %16 = vector.shape_cast %15 : vector<1xf32> to vector<1x1x1xf32>
      %17 = vector.extract %16[0, 0, 0] : f32 from vector<1x1x1xf32>
      %c0_12 = arith.constant 0 : index
      %c0_13 = arith.constant 0 : index
      %18 = memref.load %arg4[%c0_12, %c0_13] : memref<1x1xf32, #tpu.memory_space<smem>>
      memref.store %17, %arg4[%c0_12, %c0_13] : memref<1x1xf32, #tpu.memory_space<smem>>
    } else {
    }
    return
  }
  func.func @transform_0(%arg0: i32, %arg1: i32) -> (i32, i32) {
    %c1_i32 = arith.constant 1 : i32
    %0 = arith.muli %arg0, %c1_i32 : i32
    %1 = arith.addi %0, %arg1 : i32
    %c0_i32 = arith.constant 0 : i32
    %c0_i32_0 = arith.constant 0 : i32
    return %1, %c0_i32 : i32, i32
  }
  func.func @transform_1(%arg0: i32, %arg1: i32) -> (i32, i32) {
    %c1_i32 = arith.constant 1 : i32
    %0 = arith.muli %arg0, %c1_i32 : i32
    %1 = arith.addi %0, %arg1 : i32
    %c0_i32 = arith.constant 0 : i32
    %c0_i32_0 = arith.constant 0 : i32
    return %1, %c0_i32 : i32, i32
  }
  func.func @transform_2(%arg0: i32, %arg1: i32) -> (i32, i32) {
    %c0_i32 = arith.constant 0 : i32
    %c0_i32_0 = arith.constant 0 : i32
    return %arg0, %c0_i32 : i32, i32
  }
}

</mosaic_0001>

<bundles_post_ra>
// kernel: tpu_custom_call.1
= control target key start
LH: loop header
LB: loop body
LE: loop exit
PB: predicated region body
PF: predicated region fallthrough
CT: control target
= control target key end

     0   :  { %vm60_vm0 = vcmask 130048   ;;  %v290_v0 = vmov 0.0   ;;  %s454_s0 = inlined_call_operand.vmem [shape: f32[128,16], index: 0, kind: input, shape index: {}]   ;;  %s455_s1 = inlined_call_operand.vmem [shape: f32[128,16], index: 1, kind: input, shape index: {}]   ;;  %s456_s2 = inlined_call_operand.hbm [shape: f32[1,1], index: 2, kind: output, shape index: {}]  }
   0x1   :  { %61 = vst.msk [vmem:[#allocation2] sm:$0xff] %vm60_vm0, %v290_v0  ;;  %62 = vst.msk [vmem:[#allocation2 + $0x8] sm:$0xff] %vm60_vm0, %v290_v0  ;;  %v77_v1 = vld [vmem:[%s454_s0] sm:$0xff]  ;;  %v78_v2 = vld [vmem:[%s454_s0 + $0x8] sm:$0xff] }
   0x2   :  { %63 = vst.msk [vmem:[#allocation2 + $0x10] sm:$0xff] %vm60_vm0, %v290_v0  ;;  %64 = vst.msk [vmem:[#allocation2 + $0x18] sm:$0xff] %vm60_vm0, %v290_v0  ;;  %v79_v3 = vld [vmem:[%s454_s0 + $0x10] sm:$0xff]  ;;  %v80_v4 = vld [vmem:[%s454_s0 + $0x18] sm:$0xff] }
   0x3   :  { %65 = vst.msk [vmem:[#allocation2 + $0x20] sm:$0xff] %vm60_vm0, %v290_v0  ;;  %66 = vst.msk [vmem:[#allocation2 + $0x28] sm:$0xff] %vm60_vm0, %v290_v0  ;;  %v81_v5 = vld [vmem:[%s454_s0 + $0x20] sm:$0xff]  ;;  %v82_v6 = vld [vmem:[%s454_s0 + $0x28] sm:$0xff] }
   0x4   :  { %67 = vst.msk [vmem:[#allocation2 + $0x30] sm:$0xff] %vm60_vm0, %v290_v0  ;;  %68 = vst.msk [vmem:[#allocation2 + $0x38] sm:$0xff] %vm60_vm0, %v290_v0  ;;  %v83_v7 = vld [vmem:[%s454_s0 + $0x30] sm:$0xff]  ;;  %v84_v8 = vld [vmem:[%s454_s0 + $0x38] sm:$0xff] }
   0x5   :  { %69 = vst.msk [vmem:[#allocation2 + $0x40] sm:$0xff] %vm60_vm0, %v290_v0  ;;  %70 = vst.msk [vmem:[#allocation2 + $0x48] sm:$0xff] %vm60_vm0, %v290_v0  ;;  %v85_v9 = vld [vmem:[%s454_s0 + $0x40] sm:$0xff]  ;;  %v86_v10 = vld [vmem:[%s454_s0 + $0x48] sm:$0xff] }
   0x6   :  { %71 = vst.msk [vmem:[#allocation2 + $0x50] sm:$0xff] %vm60_vm0, %v290_v0  ;;  %72 = vst.msk [vmem:[#allocation2 + $0x58] sm:$0xff] %vm60_vm0, %v290_v0  ;;  %v87_v11 = vld [vmem:[%s454_s0 + $0x50] sm:$0xff]  ;;  %v88_v12 = vld [vmem:[%s454_s0 + $0x58] sm:$0xff] }
   0x7   :  { %73 = vst.msk [vmem:[#allocation2 + $0x60] sm:$0xff] %vm60_vm0, %v290_v0  ;;  %74 = vst.msk [vmem:[#allocation2 + $0x68] sm:$0xff] %vm60_vm0, %v290_v0  ;;  %v89_v13 = vld [vmem:[%s454_s0 + $0x60] sm:$0xff]  ;;  %v90_v14 = vld [vmem:[%s454_s0 + $0x68] sm:$0xff] }
   0x8   :  { %75 = vst.msk [vmem:[#allocation2 + $0x70] sm:$0xff] %vm60_vm0, %v290_v0  ;;  %76 = vst.msk [vmem:[#allocation2 + $0x78] sm:$0xff] %vm60_vm0, %v290_v0  ;;  %v93_v15 = vld [vmem:[%s455_s1] sm:$0xff]  ;;  %v94_v16 = vld [vmem:[%s455_s1 + $0x8] sm:$0xff] }
   0x9   :  { %v91_v17 = vld [vmem:[%s454_s0 + $0x70] sm:$0xff]  ;;  %v92_v18 = vld [vmem:[%s454_s0 + $0x78] sm:$0xff]  ;;  %v97_v21 = vld [vmem:[%s455_s1 + $0x20] sm:$0xff]  ;;  %v109_v22 = vsub.f32 %v77_v1, %v93_v15  ;;  %v110_v23 = vsub.f32 %v78_v2, %v94_v16 }
   0xa   :  { %v95_v19 = vld [vmem:[%s455_s1 + $0x10] sm:$0xff]  ;;  %v96_v20 = vld [vmem:[%s455_s1 + $0x18] sm:$0xff]  ;;  %v98_v24 = vld [vmem:[%s455_s1 + $0x28] sm:$0xff]  ;;  %v113_v29 = vsub.f32 %v81_v5, %v97_v21 }
   0xb   :  { %v99_v25 = vld [vmem:[%s455_s1 + $0x30] sm:$0xff]  ;;  %v100_v26 = vld [vmem:[%s455_s1 + $0x38] sm:$0xff]  ;;  %v111_v27 = vsub.f32 %v79_v3, %v95_v19  ;;  %v112_v28 = vsub.f32 %v80_v4, %v96_v20  ;;  %v101_v30 = vld [vmem:[%s455_s1 + $0x40] sm:$0xff]  ;;  %v114_v33 = vsub.f32 %v82_v6, %v98_v24  ;;  %v125_v36 = vmul.f32 %v109_v22, %v109_v22 }
   0xc   :  { %v102_v31 = vld [vmem:[%s455_s1 + $0x48] sm:$0xff]  ;;  %v103_v32 = vld [vmem:[%s455_s1 + $0x50] sm:$0xff]  ;;  %v115_v34 = vsub.f32 %v83_v7, %v99_v25  ;;  %v116_v35 = vsub.f32 %v84_v8, %v100_v26  ;;  %v104_v37 = vld [vmem:[%s455_s1 + $0x58] sm:$0xff]  ;;  %v117_v40 = vsub.f32 %v85_v9, %v101_v30  ;;  %v126_v43 = vmul.f32 %v110_v23, %v110_v23 }
   0xd   :  { %v105_v38 = vld [vmem:[%s455_s1 + $0x60] sm:$0xff]  ;;  %v106_v39 = vld [vmem:[%s455_s1 + $0x68] sm:$0xff]  ;;  %v118_v41 = vsub.f32 %v86_v10, %v102_v31  ;;  %v119_v42 = vsub.f32 %v87_v11, %v103_v32  ;;  %v107_v44 = vld [vmem:[%s455_s1 + $0x70] sm:$0xff]  ;;  %v120_v46 = vsub.f32 %v88_v12, %v104_v37  ;;  %v127_v49 = vmul.f32 %v111_v27, %v111_v27 }
   0xe   :  { %v108_v45 = vld [vmem:[%s455_s1 + $0x78] sm:$0xff]  ;;  %v121_v47 = vsub.f32 %v89_v13, %v105_v38  ;;  %v122_v48 = vsub.f32 %v90_v14, %v106_v39  ;;  %v141_v50 = vld [vmem:[#allocation2] sm:$0xff]  ;;  %v123_v51 = vsub.f32 %v91_v17, %v107_v44  ;;  %v128_v53 = vmul.f32 %v112_v28, %v112_v28  ;;  %v142_v55 = vld [vmem:[#allocation2 + $0x8] sm:$0xff] }
   0xf   :  { %v124_v52 = vsub.f32 %v92_v18, %v108_v45  ;;  %v129_v54 = vmul.f32 %v113_v29, %v113_v29  ;;  %v143_v56 = vld [vmem:[#allocation2 + $0x10] sm:$0xff]  ;;  %v144_v57 = vld [vmem:[#allocation2 + $0x18] sm:$0xff]  ;;  %v130_v58 = vmul.f32 %v114_v33, %v114_v33  ;;  %v131_v59 = vmul.f32 %v115_v34, %v115_v34  ;;  %v145_v62 = vld [vmem:[#allocation2 + $0x20] sm:$0xff] }
  0x10   :  { %v132_v60 = vmul.f32 %v116_v35, %v116_v35  ;;  %v133_v61 = vmul.f32 %v117_v40, %v117_v40  ;;  %v146_v63 = vld [vmem:[#allocation2 + $0x28] sm:$0xff]  ;;  %v147_v0 = vld [vmem:[#allocation2 + $0x30] sm:$0xff]  ;;  %v134_v1 = vmul.f32 %v118_v41, %v118_v41  ;;  %v135_v2 = vmul.f32 %v119_v42, %v119_v42  ;;  %v148_v5 = vld [vmem:[#allocation2 + $0x38] sm:$0xff] }
  0x11   :  { %v136_v3 = vmul.f32 %v120_v46, %v120_v46  ;;  %v137_v4 = vmul.f32 %v121_v47, %v121_v47  ;;  %v149_v6 = vld [vmem:[#allocation2 + $0x40] sm:$0xff]  ;;  %v150_v7 = vld [vmem:[#allocation2 + $0x48] sm:$0xff]  ;;  %v138_v8 = vmul.f32 %v122_v48, %v122_v48  ;;  %v139_v9 = vmul.f32 %v123_v51, %v123_v51  ;;  %v151_v11 = vld [vmem:[#allocation2 + $0x50] sm:$0xff] }
  0x12   :  { %v140_v10 = vmul.f32 %v124_v52, %v124_v52  ;;  %v152_v12 = vld [vmem:[#allocation2 + $0x58] sm:$0xff]  ;;  %v153_v13 = vld [vmem:[#allocation2 + $0x60] sm:$0xff]  ;;  %v157_v14 = vadd.f32 %v141_v50, %v125_v36  ;;  %v154_v15 = vld [vmem:[#allocation2 + $0x68] sm:$0xff]  ;;  %v158_v18 = vadd.f32 %v142_v55, %v126_v43  ;;  %v159_v19 = vadd.f32 %v143_v56, %v127_v49 }
  0x13   :  { %v155_v16 = vld [vmem:[#allocation2 + $0x70] sm:$0xff]  ;;  %v156_v17 = vld [vmem:[#allocation2 + $0x78] sm:$0xff]  ;;  %v160_v20 = vadd.f32 %v144_v57, %v128_v53  ;;  %v161_v21 = vadd.f32 %v145_v62, %v129_v54  ;;  %v162_v22 = vadd.f32 %v146_v63, %v130_v58  ;;  %v163_v23 = vadd.f32 %v147_v0, %v131_v59 }
  0x14   :  { %v164_v24 = vadd.f32 %v148_v5, %v132_v60  ;;  %v165_v25 = vadd.f32 %v149_v6, %v133_v61  ;;  %174 = vst.msk [vmem:[#allocation2] sm:$0xff] %vm60_vm0, %v157_v14 }
  0x15   :  { %7 = vsyncpa [#allocation4], 0  ;;  %v166_v26 = vadd.f32 %v150_v7, %v134_v1  ;;  %v167_v27 = vadd.f32 %v151_v11, %v135_v2  ;;  %v168_v28 = vadd.f32 %v152_v12, %v136_v3  ;;  %v169_v29 = vadd.f32 %v153_v13, %v137_v4  ;;  %175 = vst.msk [vmem:[#allocation2 + $0x8] sm:$0xff] %vm60_vm0, %v158_v18  ;;  %s291_s16 = smov [#allocation3]  }
  0x16   :  { %176 = vst.msk [vmem:[#allocation2 + $0x10] sm:$0xff] %vm60_vm0, %v159_v19  ;;  %177 = vst.msk [vmem:[#allocation2 + $0x18] sm:$0xff] %vm60_vm0, %v160_v20  ;;  %v170_v30 = vadd.f32 %v154_v15, %v138_v8  ;;  %v171_v31 = vadd.f32 %v155_v16, %v139_v9  ;;  %v172_v32 = vadd.f32 %v156_v17, %v140_v10 }
  0x17   :  { %178 = vst.msk [vmem:[#allocation2 + $0x20] sm:$0xff] %vm60_vm0, %v161_v21  ;;  %179 = vst.msk [vmem:[#allocation2 + $0x28] sm:$0xff] %vm60_vm0, %v162_v22 }
  0x18   :  { %180 = vst.msk [vmem:[#allocation2 + $0x30] sm:$0xff] %vm60_vm0, %v163_v23  ;;  %181 = vst.msk [vmem:[#allocation2 + $0x38] sm:$0xff] %vm60_vm0, %v164_v24 }
  0x19   :  { %182 = vst.msk [vmem:[#allocation2 + $0x40] sm:$0xff] %vm60_vm0, %v165_v25  ;;  %183 = vst.msk [vmem:[#allocation2 + $0x48] sm:$0xff] %vm60_vm0, %v166_v26 }
  0x1a   :  { %184 = vst.msk [vmem:[#allocation2 + $0x50] sm:$0xff] %vm60_vm0, %v167_v27  ;;  %185 = vst.msk [vmem:[#allocation2 + $0x58] sm:$0xff] %vm60_vm0, %v168_v28 }
  0x1b   :  { %186 = vst.msk [vmem:[#allocation2 + $0x60] sm:$0xff] %vm60_vm0, %v169_v29  ;;  %187 = vst.msk [vmem:[#allocation2 + $0x68] sm:$0xff] %vm60_vm0, %v170_v30  ;;  %v193_v33 = vld [vmem:[#allocation2] sm:$0xff] }
  0x1c   :  { %188 = vst.msk [vmem:[#allocation2 + $0x70] sm:$0xff] %vm60_vm0, %v171_v31  ;;  %189 = vst.msk [vmem:[#allocation2 + $0x78] sm:$0xff] %vm60_vm0, %v172_v32  ;;  %v194_v34 = vld [vmem:[#allocation2 + $0x8] sm:$0xff]  ;;  %v209_v37 = vsel %vm60_vm0, %v193_v33, 0.0 }
  0x1d   :  { %v195_v35 = vld [vmem:[#allocation2 + $0x10] sm:$0xff]  ;;  %v196_v36 = vld [vmem:[#allocation2 + $0x18] sm:$0xff]  ;;  %v210_v38 = vsel %vm60_vm0, %v194_v34, 0.0 }
  0x1e   :  { %v212_v39 = vsel %vm60_vm0, %v195_v35, 0.0  ;;  %v197_v40 = vld [vmem:[#allocation2 + $0x20] sm:$0xff]  ;;  %v211_v41 = vadd.f32 %v210_v38, %v209_v37  ;;  %v214_v42 = vsel %vm60_vm0, %v196_v36, 0.0  ;;  %v198_v43 = vld [vmem:[#allocation2 + $0x28] sm:$0xff] }
  0x1f   :  { %v216_v45 = vsel %vm60_vm0, %v197_v40, 0.0  ;;  %v199_v46 = vld [vmem:[#allocation2 + $0x30] sm:$0xff]  ;;  %v218_v48 = vsel %vm60_vm0, %v198_v43, 0.0  ;;  %v200_v49 = vld [vmem:[#allocation2 + $0x38] sm:$0xff] }
  0x20   :  { %v213_v44 = vadd.f32 %v212_v39, %v211_v41  ;;  %v220_v51 = vsel %vm60_vm0, %v199_v46, 0.0  ;;  %v201_v52 = vld [vmem:[#allocation2 + $0x40] sm:$0xff]  ;;  %v222_v54 = vsel %vm60_vm0, %v200_v49, 0.0  ;;  %v202_v55 = vld [vmem:[#allocation2 + $0x48] sm:$0xff] }
  0x21   :  { %v224_v57 = vsel %vm60_vm0, %v201_v52, 0.0  ;;  %v203_v58 = vld [vmem:[#allocation2 + $0x50] sm:$0xff]  ;;  %v226_v60 = vsel %vm60_vm0, %v202_v55, 0.0  ;;  %v204_v61 = vld [vmem:[#allocation2 + $0x58] sm:$0xff] }
  0x22   :  { %v215_v47 = vadd.f32 %v214_v42, %v213_v44  ;;  %v228_v63 = vsel %vm60_vm0, %v203_v58, 0.0  ;;  %v205_v0 = vld [vmem:[#allocation2 + $0x60] sm:$0xff]  ;;  %v230_v2 = vsel %vm60_vm0, %v204_v61, 0.0  ;;  %v206_v3 = vld [vmem:[#allocation2 + $0x68] sm:$0xff] }
  0x23   :  { %v232_v5 = vsel %vm60_vm0, %v205_v0, 0.0  ;;  %v207_v6 = vld [vmem:[#allocation2 + $0x70] sm:$0xff]  ;;  %v234_v8 = vsel %vm60_vm0, %v206_v3, 0.0  ;;  %v208_v9 = vld [vmem:[#allocation2 + $0x78] sm:$0xff] }
  0x24   :  { %v217_v50 = vadd.f32 %v216_v45, %v215_v47  ;;  %v236_v11 = vsel %vm60_vm0, %v207_v6, 0.0  ;;  %v238_v13 = vsel %vm60_vm0, %v208_v9, 0.0 }
  0x26   :  { %v219_v53 = vadd.f32 %v218_v48, %v217_v50 }
  0x28   :  { %v221_v56 = vadd.f32 %v220_v51, %v219_v53 }
  0x2a   :  { %v223_v59 = vadd.f32 %v222_v54, %v221_v56 }
  0x2c   :  { %v225_v62 = vadd.f32 %v224_v57, %v223_v59 }
  0x2e   :  { %v227_v1 = vadd.f32 %v226_v60, %v225_v62 }
  0x30   :  { %v229_v4 = vadd.f32 %v228_v63, %v227_v1 }
  0x32   :  { %v231_v7 = vadd.f32 %v230_v2, %v229_v4 }
  0x34   :  { %v233_v10 = vadd.f32 %v232_v5, %v231_v7 }
  0x36   :  { %v235_v12 = vadd.f32 %v234_v8, %v233_v10 }
  0x38   :  { %v237_v14 = vadd.f32 %v236_v11, %v235_v12 }
  0x3a   :  { %v239_v15 = vadd.f32 %v238_v13, %v237_v14 }
  0x3c   :  { %240 = vadd.xlane.f32.xlu0 %v239_v15 }
  0xc5   :  { %v241_v16 = vpop.xlane.xlu0 %240 }
  0xc6   :  { %v242_v17 = vrot.slane %v241_v16, 4 }
  0xc8   :  { %v243_v18 = vadd.f32 %v242_v17, %v241_v16 }
  0xca   :  { %v244_v19 = vrot.slane %v243_v18, 2 }
  0xcc   :  { %v245_v20 = vadd.f32 %v244_v19, %v243_v18 }
  0xce   :  { %v246_v21 = vrot.slane %v245_v20, 1 }
  0xd0   :  { %v247_v22 = vadd.f32 %v246_v21, %v245_v20 }
  0xd2   :  { %276 = vpush %v247_v22 }
 0x103   :  { %s277_s1 = spop %276 }
 0x104   :  { %250 = sst [smem:[#allocation3]] %s277_s1 }
 0x105   :  { %258 = dma.smem_to_hbm %s291_s16, 16, %s456_s2, [#allocation4]  }
 0x106   :  { %288 = dma.done.wait [#allocation4], 16  }
 0x107   :  { %289 = vsyncadd [#allocation4], 4294967280 }
 0x108   :  { %262 = sfence }
 0x109   :  { %263 = vsyncpa [#allocation4], 1 }

</bundles_post_ra>
